<compile_context>
chip_gen: v5e
topology: v5e:2x2
jax: 0.10.0
libtpu: 0.0.40
codegen_flags: <defaults>
</compile_context>

<pallas_src>
import jax
import jax.numpy as jnp
from jax.experimental import pallas as pl
from jax.experimental.pallas import tpu as pltpu


IN_FEATURES = 28 * 28      # 784
OUT_FEATURES = 10
K_PAD = 896                # 7 * 128  (contraction dim, lane-aligned)
N_PAD = 128                # lane-dense output width
BATCH_TILE = 128           # batch tile for the gridded (large-B) path


def _linear_relu_kernel(x_ref, w_ref, b_ref, o_ref):
    # x_ref: (Bt, Kp) bf16/f32, w_ref: (Kp, Np) bf16/f32,
    # b_ref: (1, Np) f32, o_ref: (Bt, Np) f32
    y = jnp.dot(x_ref[...], w_ref[...], preferred_element_type=jnp.float32)
    y = y + b_ref[...]                       # broadcast bias over batch
    o_ref[...] = jnp.maximum(y, 0.0).astype(o_ref.dtype)


def _pad_axis(a, axis, target):
    pad = target - a.shape[axis]
    if pad == 0:
        return a
    widths = [(0, 0)] * a.ndim
    widths[axis] = (0, pad)
    return jnp.pad(a, widths)


def linear_relu(x2d, w, b, *, compute_dtype=jnp.bfloat16):
    """relu(x2d @ w + b) on the MXU with lane-dense padded layout.

    x2d: (B, 784) f32, w: (784, 10) f32, b: (10,) or (1, 10) f32 -> (B, 10) f32
    """
    B, K = x2d.shape
    K2, N = w.shape
    assert K == IN_FEATURES and K2 == K and N == OUT_FEATURES
    b = b.reshape(1, N).astype(jnp.float32)

    # Zero-pad: K -> 896 (aligned MXU cadence), N -> 128 (unmasked lane-dense
    # stores). Padded columns come out as relu(0 + 0) = 0 and are sliced off.
    xp = _pad_axis(x2d.astype(jnp.float32), 1, K_PAD).astype(compute_dtype)
    wp = _pad_axis(_pad_axis(w.astype(jnp.float32), 0, K_PAD), 1, N_PAD)
    wp = wp.astype(compute_dtype)
    bp = _pad_axis(b, 1, N_PAD)

    itemsize = jnp.dtype(compute_dtype).itemsize
    cost = pl.CostEstimate(
        flops=2 * B * K_PAD * N_PAD,
        transcendentals=0,
        bytes_accessed=(B * K_PAD * itemsize)        # x
        + (K_PAD * N_PAD * itemsize)                 # w
        + (N_PAD * 4)                                # bias
        + (B * N_PAD * 4),                           # output
    )

    if B > BATCH_TILE and B % BATCH_TILE == 0:
        # Large batch: tile B; weight/bias blocks are invariant across the grid
        # so they stay resident in VMEM, and "parallel" lets megacore split B.
        out = pl.pallas_call(
            _linear_relu_kernel,
            out_shape=jax.ShapeDtypeStruct((B, N_PAD), jnp.float32),
            grid=(B // BATCH_TILE,),
            in_specs=[
                pl.BlockSpec((BATCH_TILE, K_PAD), lambda i: (i, 0)),
                pl.BlockSpec((K_PAD, N_PAD), lambda i: (0, 0)),
                pl.BlockSpec((1, N_PAD), lambda i: (0, 0)),
            ],
            out_specs=pl.BlockSpec((BATCH_TILE, N_PAD), lambda i: (i, 0)),
            compiler_params=pltpu.CompilerParams(
                dimension_semantics=("parallel",)),
            cost_estimate=cost,
        )(xp, wp, bp)
    else:
        # Small batch: whole-array VMEM blocks, no grid loop scaffolding.
        out = pl.pallas_call(
            _linear_relu_kernel,
            out_shape=jax.ShapeDtypeStruct((B, N_PAD), jnp.float32),
            in_specs=[
                pl.BlockSpec(memory_space=pltpu.MemorySpace.VMEM),
                pl.BlockSpec(memory_space=pltpu.MemorySpace.VMEM),
                pl.BlockSpec(memory_space=pltpu.MemorySpace.VMEM),
            ],
            out_specs=pl.BlockSpec(memory_space=pltpu.MemorySpace.VMEM),
            cost_estimate=cost,
        )(xp, wp, bp)

    return out[:, :N]


def net_forward(x_nchw, w, b, *, compute_dtype=jnp.bfloat16):
    # Glue: flatten NCHW -> (B, 784), equivalent to x.view(x.size(0), -1).
    B = x_nchw.shape[0]
    x2d = x_nchw.reshape(B, -1).astype(jnp.float32)
    return linear_relu(x2d, w, b, compute_dtype=compute_dtype)


if __name__ == "__main__":
    key = jax.random.PRNGKey(0)
    k_x, k_w, k_b, k_x2 = jax.random.split(key, 4)

    B, C, H, W = 8, 1, 28, 28          # MNIST-style input, small batch
    in_features = C * H * W            # 784
    out_features = 10

    # nn.Linear-style U(-1/sqrt(fan_in), +1/sqrt(fan_in)) init.
    bound = 1.0 / jnp.sqrt(jnp.float32(in_features))
    w = jax.random.uniform(k_w, (in_features, out_features),
                           minval=-bound, maxval=bound, dtype=jnp.float32)
    b = jax.random.uniform(k_b, (1, out_features),
                           minval=-bound, maxval=bound, dtype=jnp.float32)

    x = jax.random.normal(k_x, (B, C, H, W), dtype=jnp.float32)

    # --- small-batch (gridless) path ---
    out = jax.block_until_ready(net_forward(x, w, b))
    assert out.shape == (B, out_features)

    x2d = x.reshape(B, -1)
    xq = x2d.astype(jnp.bfloat16).astype(jnp.float32)
    wq = w.astype(jnp.bfloat16).astype(jnp.float32)

    # Kernel-math check against a same-precision (bf16 inputs, f32 accum) reference.
    ref_exact = jnp.maximum(xq @ wq + b, 0.0)
    assert jnp.allclose(out, ref_exact, atol=1e-4, rtol=1e-4)

    # Semantics check against the full-f32 PyTorch-equivalent reference
    # (relaxed tolerance covers bf16 input rounding; accumulation stays f32).
    ref_f32 = jnp.maximum(x2d @ w + b, 0.0)
    assert jnp.allclose(out, ref_f32, atol=5e-2, rtol=5e-2)

    # --- large-batch (tiled, "parallel" grid) path ---
    B2 = 256
    x_big = jax.random.normal(k_x2, (B2, C, H, W), dtype=jnp.float32)
    out_big = jax.block_until_ready(net_forward(x_big, w, b))
    assert out_big.shape == (B2, out_features)
    xq2 = x_big.reshape(B2, -1).astype(jnp.bfloat16).astype(jnp.float32)
    ref_big = jnp.maximum(xq2 @ wq + b, 0.0)
    assert jnp.allclose(out_big, ref_big, atol=1e-4, rtol=1e-4)

    print("KERNEL_OK")
</pallas_src>

<mosaic_0001>
module attributes {stable_mosaic.version = 11 : i64} {
  func.func @_linear_relu_kernel(%arg0: memref<8x896xbf16, #tpu.memory_space<vmem>>, %arg1: memref<896x128xbf16, #tpu.memory_space<vmem>>, %arg2: memref<1x128xf32, #tpu.memory_space<vmem>>, %arg3: memref<8x128xf32, #tpu.memory_space<vmem>>) attributes {dimension_semantics = [], scalar_prefetch = 0 : i64, scratch_operands = 0 : i64, tpu.core_type = #tpu.core_type<tc>} {
    %c0 = arith.constant 0 : index
    %c0_0 = arith.constant 0 : index
    %0 = vector.load %arg0[%c0, %c0_0] : memref<8x896xbf16, #tpu.memory_space<vmem>>, vector<8x896xbf16>
    %c0_1 = arith.constant 0 : index
    %c0_2 = arith.constant 0 : index
    %1 = vector.load %arg1[%c0_1, %c0_2] : memref<896x128xbf16, #tpu.memory_space<vmem>>, vector<896x128xbf16>
    %cst = arith.constant dense<0.000000e+00> : vector<8x128xf32>
    %2 = tpu.matmul %0, %1, %cst {dimension_numbers = #tpu.dot_dimension_numbers<[1], [0], [0], [1], [0, 0, 1, 1], [], []>} : vector<8x896xbf16>, vector<896x128xbf16>, vector<8x128xf32> -> vector<8x128xf32>
    %c0_3 = arith.constant 0 : index
    %c0_4 = arith.constant 0 : index
    %3 = vector.load %arg2[%c0_3, %c0_4] : memref<1x128xf32, #tpu.memory_space<vmem>>, vector<1x128xf32>
    %4 = vector.broadcast %3 : vector<1x128xf32> to vector<8x128xf32>
    %5 = arith.addf %2, %4 : vector<8x128xf32>
    %cst_5 = arith.constant 0.000000e+00 : f32
    %6 = vector.broadcast %cst_5 : f32 to vector<8x128xf32>
    %7 = arith.maximumf %5, %6 : vector<8x128xf32>
    %c0_6 = arith.constant 0 : index
    %c0_7 = arith.constant 0 : index
    %8 = vector.load %arg3[%c0_6, %c0_7] : memref<8x128xf32, #tpu.memory_space<vmem>>, vector<8x128xf32>
    tpu.vector_store %arg3[%c0_6, %c0_7], %7 {strides = array<i32>} : memref<8x128xf32, #tpu.memory_space<vmem>>, vector<8x128xf32>,
    return
  }
}

</mosaic_0001>

<bundles_post_ra>
// kernel: tpu_custom_call.1
= control target key start
LH: loop header
LB: loop body
LE: loop exit
PB: predicated region body
PF: predicated region fallthrough
CT: control target
= control target key end

     0   :  { %8 = vsyncpa [#allocation3], 0  ;;  %s1038_s0 = inlined_call_operand.hbm [shape: bf16[8,896], index: 0, kind: input, shape index: {}]   ;;  %s1039_s1 = inlined_call_operand.hbm [shape: bf16[896,128], index: 1, kind: input, shape index: {}]   ;;  %s1040_s2 = inlined_call_operand.vmem [shape: f32[1,128], index: 2, kind: input, shape index: {}]   ;;  %s1041_s3 = inlined_call_operand.hbm [shape: f32[8,128], index: 3, kind: output, shape index: {}]  }
   0x1   :  { %9 = vsyncpa [#allocation6], 0 }
   0x2   :  { %10 = vsyncpa [#allocation4], 0  ;;  %s16_s14 = sshll.u32 %s1038_s0, 4  ;;  %s1001_s15 = smov [#allocation2]   ;;  %s17_s14 = int_to_ptr.hbm [resolvable:$true] %s16_s14 }
   0x3   :  { %s18_s16 = sshll.u32 %s1001_s15, 4  ;;  %s26_s19 = sshll.u32 %s1039_s1, 4  ;;  %s19_s16 = int_to_ptr.vmem [resolvable:$true] %s18_s16  ;;  %s27_s19 = int_to_ptr.hbm [resolvable:$true] %s26_s19 }
   0x4   :  { %21 = dma.hbm_to_vmem [thread:$0]  %s17_s14, 448, %s19_s16, [#allocation3]  }
   0x5   :  { %s1002_s20 = smov [#allocation5]   ;;  %s1003_s22 = smov 64  }
   0x6   :  { %s28_s21 = sshll.u32 %s1002_s20, 4  ;;  %s1004_s23 = smov 4   ;;  %s29_s21 = int_to_ptr.vmem [resolvable:$true] %s28_s21 }
   0x7   :  { %34 = dma.hbm_to_vmem [thread:$0]  %s27_s19, 7168, %s29_s21, [#allocation6], %s1003_s22, %s1003_s22, %s1004_s23  }
   0x8   :  { %995 = dma.done.wait [#allocation3], 448  }
   0x9   :  { %996 = vsyncadd [#allocation3], 4294966848 }
   0xa   :  { %997 = dma.done.wait [#allocation6], 7168  }
   0xb   :  { %998 = vsyncadd [#allocation6], 4294960128  ;;  %v868_v0 = vld [vmem:[#allocation5 + $0x38] sm:$0xff]  ;;  %v867_v3 = vld [vmem:[#allocation5 + $0x30] sm:$0xff]  ;;  %s1005_s24 = smov [#allocation7]   ;;  %s626_s28 = sshll.u32 %s1041_s3, 4  ;;  %s627_s28 = int_to_ptr.hbm [resolvable:$true] %s626_s28 }
   0xc   :  { %v876_v1 = vld [vmem:[#allocation5 + $0x78] sm:$0xff]  ;;  %526 = vmatpush.bf16.msra.mxu0 %v868_v0  ;;  %v875_v4 = vld [vmem:[#allocation5 + $0x70] sm:$0xff]  ;;  %v866_v7 = vld [vmem:[#allocation5 + $0x28] sm:$0xff]  ;;  %s624_s25 = sshll.u32 %s1005_s24, 4  ;;  %s625_s25 = int_to_ptr.vmem [resolvable:$true] %s624_s25 }
   0xd   :  { %v884_v2 = vld [vmem:[#allocation5 + $0xb8] sm:$0xff]  ;;  %539 = vmatpush.bf16.msra.mxu1 %v876_v1  ;;  %v883_v5 = vld [vmem:[#allocation5 + $0xb0] sm:$0xff]  ;;  %v874_v8 = vld [vmem:[#allocation5 + $0x68] sm:$0xff] }
   0xe   :  { %552 = vmatpush.bf16.msra.mxu2 %v884_v2  ;;  %v892_v6 = vld [vmem:[#allocation5 + $0xf8] sm:$0xff]  ;;  %v882_v9 = vld [vmem:[#allocation5 + $0xa8] sm:$0xff]  ;;  %v891_v10 = vld [vmem:[#allocation5 + $0xf0] sm:$0xff] }
   0xf   :  { %565 = vmatpush.bf16.msra.mxu3 %v892_v6  ;;  %v865_v11 = vld [vmem:[#allocation5 + $0x20] sm:$0xff]  ;;  %v890_v14 = vld [vmem:[#allocation5 + $0xe8] sm:$0xff]  ;;  %v864_v15 = vld [vmem:[#allocation5 + $0x18] sm:$0xff] }
  0x10   :  { %527 = vmatpush.bf16.msra.mxu0 %v867_v3  ;;  %v873_v12 = vld [vmem:[#allocation5 + $0x60] sm:$0xff]  ;;  %v872_v16 = vld [vmem:[#allocation5 + $0x58] sm:$0xff]  ;;  %v863_v19 = vld [vmem:[#allocation5 + $0x10] sm:$0xff] }
  0x11   :  { %540 = vmatpush.bf16.msra.mxu1 %v875_v4  ;;  %v881_v13 = vld [vmem:[#allocation5 + $0xa0] sm:$0xff]  ;;  %v880_v17 = vld [vmem:[#allocation5 + $0x98] sm:$0xff]  ;;  %v871_v20 = vld [vmem:[#allocation5 + $0x50] sm:$0xff] }
  0x12   :  { %553 = vmatpush.bf16.msra.mxu2 %v883_v5  ;;  %v889_v18 = vld [vmem:[#allocation5 + $0xe0] sm:$0xff]  ;;  %v879_v21 = vld [vmem:[#allocation5 + $0x90] sm:$0xff]  ;;  %v888_v22 = vld [vmem:[#allocation5 + $0xd8] sm:$0xff] }
  0x13   :  { %566 = vmatpush.bf16.msra.mxu3 %v891_v10  ;;  %v862_v23 = vld [vmem:[#allocation5 + $0x8] sm:$0xff]  ;;  %v887_v27 = vld [vmem:[#allocation5 + $0xd0] sm:$0xff]  ;;  %v861_v30 = vld [vmem:[#allocation5] sm:$0xff] }
  0x14   :  { %528 = vmatpush.bf16.msra.mxu0 %v866_v7  ;;  %v870_v24 = vld [vmem:[#allocation5 + $0x48] sm:$0xff]  ;;  %v869_v31 = vld [vmem:[#allocation5 + $0x40] sm:$0xff]  ;;  %v900_v35 = vld [vmem:[#allocation5 + $0x138] sm:$0xff] }
  0x15   :  { %541 = vmatpush.bf16.msra.mxu1 %v874_v8  ;;  %v45_v25 = vld [vmem:[#allocation2] sm:$0xff]  ;;  %v46_v28 = vld [vmem:[#allocation2 + $0x8] sm:$0xff]  ;;  %v908_v36 = vld [vmem:[#allocation5 + $0x178] sm:$0xff] }
  0x16   :  { %554 = vmatpush.bf16.msra.mxu2 %v882_v9  ;;  %v878_v26 = vld [vmem:[#allocation5 + $0x88] sm:$0xff]  ;;  %v169_v29 = vunpack.c.l.b16 %v45_v25  ;;  %v171_v32 = vunpack.c.l.b16 %v46_v28  ;;  %v170_v33 = vunpack.c.h.b16 %v45_v25  ;;  %v877_v34 = vld [vmem:[#allocation5 + $0x80] sm:$0xff]  ;;  %v916_v37 = vld [vmem:[#allocation5 + $0x1b8] sm:$0xff]  ;;  %v172_v46 = vunpack.c.h.b16 %v46_v28 }
  0x17   :  { %567 = vmatpush.bf16.msra.mxu3 %v890_v14  ;;  %v886_v38 = vld [vmem:[#allocation5 + $0xc8] sm:$0xff]  ;;  %v899_v42 = vld [vmem:[#allocation5 + $0x130] sm:$0xff]  ;;  %v885_v45 = vld [vmem:[#allocation5 + $0xc0] sm:$0xff] }
  0x18   :  { %529 = vmatpush.bf16.msra.mxu0 %v865_v11  ;;  %v176_v39 = vpack.c.b16 %v169_v29, %v169_v29  ;;  %v178_v40 = vpack.c.b16 %v171_v32, %v171_v32  ;;  %v177_v41 = vpack.c.b16 %v170_v33, %v170_v33  ;;  %v907_v43 = vld [vmem:[#allocation5 + $0x170] sm:$0xff]  ;;  %v898_v47 = vld [vmem:[#allocation5 + $0x128] sm:$0xff]  ;;  %v179_v50 = vpack.c.b16 %v172_v46, %v172_v46  ;;  %v897_v51 = vld [vmem:[#allocation5 + $0x120] sm:$0xff] }
  0x19   :  { %542 = vmatpush.bf16.msra.mxu1 %v873_v12  ;;  %v915_v44 = vld [vmem:[#allocation5 + $0x1b0] sm:$0xff]  ;;  %v906_v48 = vld [vmem:[#allocation5 + $0x168] sm:$0xff]  ;;  %v905_v52 = vld [vmem:[#allocation5 + $0x160] sm:$0xff] }
  0x1a   :  { %555 = vmatpush.bf16.msra.mxu2 %v881_v13  ;;  %v914_v49 = vld [vmem:[#allocation5 + $0x1a8] sm:$0xff]  ;;  %v913_v53 = vld [vmem:[#allocation5 + $0x1a0] sm:$0xff]  ;;  %v896_v54 = vld [vmem:[#allocation5 + $0x118] sm:$0xff] }
  0x1b   :  { %568 = vmatpush.bf16.msra.mxu3 %v889_v18  ;;  %v904_v55 = vld [vmem:[#allocation5 + $0x158] sm:$0xff]  ;;  %v895_v57 = vld [vmem:[#allocation5 + $0x110] sm:$0xff]  ;;  %v894_v60 = vld [vmem:[#allocation5 + $0x108] sm:$0xff] }
  0x1c   :  { %530 = vmatpush.bf16.msra.mxu0 %v864_v15  ;;  %v912_v56 = vld [vmem:[#allocation5 + $0x198] sm:$0xff]  ;;  %v903_v58 = vld [vmem:[#allocation5 + $0x150] sm:$0xff]  ;;  %v902_v62 = vld [vmem:[#allocation5 + $0x148] sm:$0xff] }
  0x1d   :  { %543 = vmatpush.bf16.msra.mxu1 %v872_v16  ;;  %v911_v59 = vld [vmem:[#allocation5 + $0x190] sm:$0xff]  ;;  %v910_v63 = vld [vmem:[#allocation5 + $0x188] sm:$0xff]  ;;  %v48_v0 = vld [vmem:[#allocation2 + $0x18] sm:$0xf] }
  0x1e   :  { %556 = vmatpush.bf16.msra.mxu2 %v880_v17  ;;  %v47_v61 = vld [vmem:[#allocation2 + $0x10] sm:$0xff]  ;;  %v893_v2 = vld [vmem:[#allocation5 + $0x100] sm:$0xff]  ;;  %v175_v4 = vunpack.c.l.b16 %v48_v0 }
  0x1f   :  { %569 = vmatpush.bf16.msra.mxu3 %v888_v22  ;;  %v173_v1 = vunpack.c.l.b16 %v47_v61  ;;  %v174_v3 = vunpack.c.h.b16 %v47_v61  ;;  %v901_v5 = vld [vmem:[#allocation5 + $0x140] sm:$0xff] }
  0x20   :  { %531 = vmatpush.bf16.msra.mxu0 %v863_v19  ;;  %v909_v6 = vld [vmem:[#allocation5 + $0x180] sm:$0xff]  ;;  %v182_v9 = vpack.c.b16 %v175_v4, %v175_v4 }
  0x21   :  { %544 = vmatpush.bf16.msra.mxu1 %v871_v20  ;;  %v180_v7 = vpack.c.b16 %v173_v1, %v173_v1  ;;  %v181_v8 = vpack.c.b16 %v174_v3, %v174_v3  ;;  %v922_v15 = vld [vmem:[%s1040_s2] ss:$0 sm:$0xff] }
  0x22   :  { %557 = vmatpush.bf16.msra.mxu2 %v879_v21 }
  0x23   :  { %570 = vmatpush.bf16.msra.mxu3 %v887_v27 }
  0x24   :  { %532 = vmatpush.bf16.msra.mxu0 %v862_v23 }
  0x25   :  { %545 = vmatpush.bf16.msra.mxu1 %v870_v24 }
  0x26   :  { %558 = vmatpush.bf16.msra.mxu2 %v878_v26 }
  0x27   :  { %571 = vmatpush.bf16.msra.mxu3 %v886_v38 }
  0x28   :  { %533 = vmatpush.bf16.msra.mxu0 %v861_v30 }
  0x29   :  { %546 = vmatpush.bf16.msra.mxu1 %v869_v31 }
  0x2a   :  { %559 = vmatpush.bf16.msra.mxu2 %v877_v34 }
  0x2b   :  { %534 = vmatmul.bf16.vlgmr.msra.gmra.mxu0 %v176_v39  ;;  %572 = vmatpush.bf16.msra.mxu3 %v885_v45 }
  0x2c   :  { %578 = vmatpush.bf16.msrb.mxu0 %v900_v35  ;;  %547 = vmatmul.bf16.vlgmr.msra.gmra.mxu1 %v177_v41 }
  0x2d   :  { %591 = vmatpush.bf16.msrb.mxu1 %v908_v36  ;;  %560 = vmatmul.bf16.vlgmr.msra.gmra.mxu2 %v178_v40 }
  0x2e   :  { %604 = vmatpush.bf16.msrb.mxu2 %v916_v37  ;;  %573 = vmatmul.bf16.vlgmr.msra.gmra.mxu3 %v179_v50 }
  0x30   :  { %579 = vmatpush.bf16.msrb.mxu0 %v899_v42 }
  0x31   :  { %592 = vmatpush.bf16.msrb.mxu1 %v907_v43 }
  0x32   :  { %605 = vmatpush.bf16.msrb.mxu2 %v915_v44 }
  0x34   :  { %580 = vmatpush.bf16.msrb.mxu0 %v898_v47 }
  0x35   :  { %593 = vmatpush.bf16.msrb.mxu1 %v906_v48 }
  0x36   :  { %606 = vmatpush.bf16.msrb.mxu2 %v914_v49 }
  0x38   :  { %581 = vmatpush.bf16.msrb.mxu0 %v897_v51 }
  0x39   :  { %594 = vmatpush.bf16.msrb.mxu1 %v905_v52 }
  0x3a   :  { %607 = vmatpush.bf16.msrb.mxu2 %v913_v53 }
  0x3c   :  { %582 = vmatpush.bf16.msrb.mxu0 %v896_v54 }
  0x3d   :  { %595 = vmatpush.bf16.msrb.mxu1 %v904_v55 }
  0x3e   :  { %608 = vmatpush.bf16.msrb.mxu2 %v912_v56 }
  0x40   :  { %583 = vmatpush.bf16.msrb.mxu0 %v895_v57 }
  0x41   :  { %596 = vmatpush.bf16.msrb.mxu1 %v903_v58 }
  0x42   :  { %609 = vmatpush.bf16.msrb.mxu2 %v911_v59 }
  0x44   :  { %584 = vmatpush.bf16.msrb.mxu0 %v894_v60 }
  0x45   :  { %597 = vmatpush.bf16.msrb.mxu1 %v902_v62 }
  0x46   :  { %610 = vmatpush.bf16.msrb.mxu2 %v910_v63 }
  0x48   :  { %585 = vmatpush.bf16.msrb.mxu0 %v893_v2 }
  0x49   :  { %598 = vmatpush.bf16.msrb.mxu1 %v901_v5 }
  0x4a   :  { %611 = vmatpush.bf16.msrb.mxu2 %v909_v6 }
  0x4b   :  { %586 = vmatmul.bf16.vlgmr.msrb.gmra.mxu0 %v180_v7 }
  0x4c   :  { %599 = vmatmul.bf16.vlgmr.msrb.gmra.mxu1 %v181_v8 }
  0x4d   :  { %612 = vmatmul.bf16.vlgmr.msrb.gmra.mxu2 %v182_v9 }
  0xa8   :  { %v535_v10 = vpop.f32.mrf.mxu0 }
  0xa9   :  { %v548_v11 = vpop.f32.mrf.mxu1  ;;  %v536_v18 = vadd.f32 %v922_v15, %v535_v10 }
  0xab   :  { %v549_v19 = vadd.f32 %v548_v11, %v536_v18 }
  0xb0   :  { %v561_v12 = vpop.f32.mrf.mxu2  ;;  %v537_v13 = vpop.f32.mrf.mxu0 }
  0xb1   :  { %v550_v14 = vpop.f32.mrf.mxu1  ;;  %v574_v16 = vpop.f32.mrf.mxu3  ;;  %v562_v21 = vadd.f32 %v561_v12, %v549_v19 }
  0xb3   :  { %v575_v22 = vadd.f32 %v574_v16, %v562_v21 }
  0xb8   :  { %v563_v17 = vpop.f32.mrf.mxu2 }
  0xb9   :  { %v576_v20 = vpop.f32.mrf.mxu3 }
  0xc8   :  { %v587_v23 = vpop.f32.mrf.mxu0 }
  0xc9   :  { %v600_v24 = vpop.f32.mrf.mxu1  ;;  %v588_v25 = vadd.f32 %v587_v23, %v575_v22 }
  0xcb   :  { %v601_v26 = vadd.f32 %v600_v24, %v588_v25 }
  0xd0   :  { %v613_v27 = vpop.f32.mrf.mxu2  ;;  %v589_v29 = vpop.f32.mrf.mxu0 }
  0xd1   :  { %v614_v28 = vadd.f32 %v613_v27, %v601_v26  ;;  %v602_v30 = vpop.f32.mrf.mxu1 }
  0xd3   :  { %v617_v31 = vmax.f32 %v614_v28, 0.0 }
  0xd5   :  { %618 = vst [vmem:[#allocation7] sm:$0xff] %v617_v31 }
  0xd6   :  { %629 = dma.vmem_to_hbm [thread:$0]  %s625_s25, 128, %s627_s28, [#allocation4]  }
  0xd8   :  { %v615_v32 = vpop.f32.mrf.mxu2 }
  0xd9   :  { %999 = dma.done.wait [#allocation4], 128  }
  0xda   :  { %1000 = vsyncadd [#allocation4], 4294967168 }
  0xdb   :  { %634 = vsyncpa [#allocation3], 1 }
  0xdc   :  { %635 = vsyncpa [#allocation6], 1 }
  0xdd   :  { %636 = vsyncpa [#allocation4], 1 }

</bundles_post_ra>
